<compile_context>
chip_gen: v5e
topology: v5e:2x2
jax: 0.10.0
libtpu: 0.0.40
codegen_flags: <defaults>
</compile_context>

<pallas_src>
import functools

import jax
import jax.numpy as jnp
from jax.experimental import pallas as pl
from jax.experimental.pallas import tpu as pltpu


_SQRT_8_OVER_PI = 1.5957691216057308  # 2*sqrt(2/pi)


def _gelu_tanh_ref(x):
    # PyTorch F.gelu(..., approximate='tanh'), tanh form (reference only).
    c = 0.7978845608028654
    return 0.5 * x * (1.0 + jnp.tanh(c * (x + 0.044715 * x * x * x)))


def _gelu_sigmoid(x):
    # Identical math via the logistic identity: 0.5*(1+tanh(z)) == sigmoid(2z).
    z = _SQRT_8_OVER_PI * (x + 0.044715 * (x * x * x))
    return x * (1.0 / (1.0 + jnp.exp(-z)))


def _round_up(x, m):
    return (x + m - 1) // m * m


def _chip_defaults():
    """Per-generation tile defaults, VMEM capacity and bf16-math capability."""
    kind = ""
    try:
        kind = jax.devices()[0].device_kind.lower()
    except Exception:  # pragma: no cover - defensive
        pass
    if "v7" in kind or "tpu7" in kind:
        # 64 MiB VMEM per TensorCore; both TCs stream the same weight chunks
        # under ("parallel","arbitrary"), so keep th modest.
        return dict(tm=512, th=256, vmem_cap=64 << 20, bf16_math=True)
    if "v6" in kind:
        return dict(tm=1024, th=512, vmem_cap=128 << 20, bf16_math=True)
    if "v5e" in kind or "v5 lite" in kind or "v5lite" in kind or "v5litepod" in kind:
        # No bf16 VPU/EUP on v5e; 128-aligned tiles, lower intensity threshold.
        return dict(tm=512, th=512, vmem_cap=128 << 20, bf16_math=False)
    # Unknown / older generation: conservative.
    return dict(tm=512, th=256, vmem_cap=64 << 20, bf16_math=False)


def _pick_hidden_chunk(H, th_max, align=128):
    """Largest `align`-multiple divisor of H that is <= th_max (never all of H
    unless H itself is small enough)."""
    best = None
    t = align
    lim = min(H, max(align, th_max))
    while t <= lim:
        if H % t == 0:
            best = t
        t += align
    if best is not None:
        return best
    if H <= max(align, th_max):
        return H
    for t in range(min(th_max, H), 0, -1):   # rare: H not 128-aligned
        if H % t == 0:
            return t
    return H


def _vmem_footprint(tm, th, C, in_b, w_b, out_b, gelu_b):
    buf = 2 * (tm * C * in_b              # x tile (double-buffered)
               + C * th * w_b             # W1 chunk
               + th * w_b                 # b1 chunk
               + th * C * w_b             # W2 chunk
               + C * w_b)                 # b2
    buf += 2 * tm * C * out_b             # output tile (double-buffered)
    buf += tm * C * 4                     # f32 accumulator scratch
    buf += tm * th * 4 + tm * th * gelu_b  # matmul result + GELU intermediate
    return buf


def mlp_kernel(x_ref, w1_ref, b1_ref, w2_ref, b2_ref, o_ref, acc_ref, *,
               gelu_dtype):
    # x_ref : (tm, C)        w1_ref: (C, th)    b1_ref: (1, th)
    # w2_ref: (th, C)        b2_ref: (1, C)     o_ref : (tm, C)
    # acc_ref: (tm, C) f32 accumulator, resident across the hidden axis.
    hk = pl.program_id(1)

    @pl.when(hk == 0)
    def _init():
        # Fold the second bias into the accumulator init (once per out tile).
        acc_ref[...] = jnp.broadcast_to(
            b2_ref[...].astype(jnp.float32), acc_ref.shape)

    # ff1 chunk: native-dtype operands on the MXU, f32 accumulation.
    h32 = jnp.dot(x_ref[...], w1_ref[...], preferred_element_type=jnp.float32)
    # GELU (+b1) in gelu_dtype: bf16 on v6e/v7x (bf16 VPU/EUP), f32 elsewhere.
    h = _gelu_sigmoid(h32.astype(gelu_dtype) + b1_ref[...].astype(gelu_dtype))

    # dropout (eval) -> identity

    # ff2 chunk: activation in the weight dtype on the MXU, accumulate in f32.
    acc_ref[...] += jnp.dot(h.astype(w2_ref.dtype), w2_ref[...],
                            preferred_element_type=jnp.float32)

    @pl.when(hk == pl.num_programs(1) - 1)
    def _finalize():
        # dropout (eval) -> identity
        o_ref[...] = acc_ref[...].astype(o_ref.dtype)


@functools.partial(jax.jit, static_argnames=("tm", "th", "compute_dtype"))
def mlp_forward(x, w1, b1, w2, b2, *, tm=None, th=None,
                compute_dtype=jnp.bfloat16):
    """x: (B, T, C); w1: (C, H); b1: (H,); w2: (H, C); b2: (C,)  with H=4C.

    compute_dtype: dtype fed to the MXU (default bf16); accumulation is f32
    and the output is returned in x.dtype.
    """
    B, T, C = x.shape
    H = w1.shape[1]
    M = B * T

    defaults = _chip_defaults()
    tm = defaults["tm"] if tm is None else tm
    th = defaults["th"] if th is None else th

    out_dtype = x.dtype
    cdt = jnp.dtype(x.dtype if compute_dtype is None else compute_dtype)
    gelu_dtype = cdt.type if (defaults["bf16_math"] and cdt == jnp.bfloat16) \
        else jnp.float32

    c_itemsize = cdt.itemsize
    out_itemsize = jnp.dtype(out_dtype).itemsize
    gelu_itemsize = jnp.dtype(gelu_dtype).itemsize
    sub = max(8, 32 // c_itemsize)        # sublane alignment: 8 f32 / 16 bf16

    # Row tile (clamped for tiny inputs) and hidden chunk (divides H, 128-aligned).
    tm_eff = _round_up(max(sub, min(tm, _round_up(M, sub))), sub)
    th_eff = _pick_hidden_chunk(H, th)

    # Fit the double-buffered pipeline under ~80% of this chip's VMEM.
    budget = int(0.8 * defaults["vmem_cap"])
    while _vmem_footprint(tm_eff, th_eff, C, c_itemsize, c_itemsize,
                          out_itemsize, gelu_itemsize) > budget:
        if th_eff >= 256 and (th_eff // 2) % 128 == 0:
            th_eff //= 2          # still divides H (th_eff//2 | th_eff | H)
        elif tm_eff >= 2 * sub:
            tm_eff = _round_up(tm_eff // 2, sub)
        else:
            break

    M_pad = _round_up(M, tm_eff)
    n_m = M_pad // tm_eff
    n_h = pl.cdiv(H, th_eff)      # th_eff divides H by construction

    # Cast operands to the compute dtype at the boundary (bf16 by default).
    x2d = x.reshape(M, C).astype(cdt)
    if M_pad != M:
        x2d = jnp.pad(x2d, ((0, M_pad - M), (0, 0)))
    w1c = w1.astype(cdt)
    w2c = w2.astype(cdt)
    b1_2d = b1.reshape(1, H).astype(cdt)
    b2_2d = b2.reshape(1, C).astype(cdt)

    footprint = _vmem_footprint(tm_eff, th_eff, C, c_itemsize, c_itemsize,
                                out_itemsize, gelu_itemsize)
    vmem_limit = min(int(0.9 * defaults["vmem_cap"]),
                     max(32 << 20, footprint * 5 // 4 + (2 << 20)))

    cost = pl.CostEstimate(
        flops=4 * M_pad * C * H,                        # two (M,C,H) matmuls
        transcendentals=M_pad * H,                      # exp in GELU
        bytes_accessed=M_pad * C * (c_itemsize + out_itemsize)   # x in + out
        + n_m * (w1.size + b1.size + w2.size) * c_itemsize
        + b2.size * c_itemsize,
    )

    kernel = functools.partial(mlp_kernel, gelu_dtype=gelu_dtype)

    out2d = pl.pallas_call(
        kernel,
        out_shape=jax.ShapeDtypeStruct((M_pad, C), out_dtype),
        grid_spec=pltpu.PrefetchScalarGridSpec(
            num_scalar_prefetch=0,
            grid=(n_m, n_h),
            in_specs=[
                pl.BlockSpec((tm_eff, C), lambda i, k: (i, 0)),   # x tile
                pl.BlockSpec((C, th_eff), lambda i, k: (0, k)),   # W1 chunk
                pl.BlockSpec((1, th_eff), lambda i, k: (0, k)),   # b1 chunk
                pl.BlockSpec((th_eff, C), lambda i, k: (k, 0)),   # W2 chunk
                pl.BlockSpec((1, C), lambda i, k: (0, 0)),        # b2
            ],
            out_specs=pl.BlockSpec((tm_eff, C), lambda i, k: (i, 0)),
            scratch_shapes=[pltpu.VMEM((tm_eff, C), jnp.float32)],
        ),
        compiler_params=pltpu.CompilerParams(
            dimension_semantics=("parallel", "arbitrary"),
            vmem_limit_bytes=vmem_limit),
        cost_estimate=cost,
    )(x2d, w1c, b1_2d, w2c, b2_2d)

    if M_pad != M:
        out2d = out2d[:M]
    return out2d.reshape(B, T, C)


def init_params(key, n_embd):
    """Deterministic init matching nn.Linear shapes (stored pre-transposed)."""
    hidden = 4 * n_embd
    k1, k2, k3, k4 = jax.random.split(key, 4)
    lim1 = 1.0 / (n_embd ** 0.5)
    lim2 = 1.0 / (hidden ** 0.5)
    # ff1.weight is (hidden, n_embd) in torch; keep its transpose (n_embd, hidden)
    w1 = jax.random.uniform(k1, (n_embd, hidden), jnp.float32, -lim1, lim1)
    b1 = jax.random.uniform(k2, (hidden,), jnp.float32, -lim1, lim1)
    # ff2.weight is (n_embd, hidden) in torch; keep its transpose (hidden, n_embd)
    w2 = jax.random.uniform(k3, (hidden, n_embd), jnp.float32, -lim2, lim2)
    b2 = jax.random.uniform(k4, (n_embd,), jnp.float32, -lim2, lim2)
    return w1, b1, w2, b2


if __name__ == "__main__":
    # Small shapes consistent with the GPT MLP: (batch, seq, n_embd)
    B, T, C = 2, 32, 128   # n_embd=128 -> hidden=512 (lane-aligned)
    key = jax.random.PRNGKey(0)
    kx, kp = jax.random.split(key)

    x = jax.random.normal(kx, (B, T, C), dtype=jnp.float32)
    w1, b1, w2, b2 = init_params(kp, C)

    # Pure-JAX f32 reference (tanh-form GELU, as in PyTorch).
    x2d = x.reshape(-1, C)
    ref = (jnp.dot(_gelu_tanh_ref(jnp.dot(x2d, w1) + b1), w2) + b2
           ).reshape(B, T, C)

    # 1) f32 compute path, multi-tile grid (row padding + 2 hidden chunks).
    out_f32 = mlp_forward(x, w1, b1, w2, b2, tm=48, th=256,
                          compute_dtype=jnp.float32)
    jax.block_until_ready(out_f32)
    assert jnp.allclose(out_f32, ref, atol=1e-3, rtol=1e-3), \
        "mismatch vs reference (f32 tiled path)"

    # 2) Generation-default tiling with bf16 MXU operands (default path).
    out_bf16 = mlp_forward(x, w1, b1, w2, b2)
    jax.block_until_ready(out_bf16)
    assert jnp.allclose(out_bf16, ref, atol=3e-2, rtol=3e-2), \
        "mismatch vs reference (bf16 default path)"

    print("KERNEL_OK")
</pallas_src>

<mosaic_0001>
module attributes {stable_mosaic.version = 11 : i64} {
  func.func @mlp_kernel(%arg0: i32, %arg1: i32, %arg2: memref<48x128xf32, #tpu.memory_space<vmem>>, %arg3: memref<128x256xf32, #tpu.memory_space<vmem>>, %arg4: memref<1x256xf32, #tpu.memory_space<vmem>>, %arg5: memref<256x128xf32, #tpu.memory_space<vmem>>, %arg6: memref<1x128xf32, #tpu.memory_space<vmem>>, %arg7: memref<48x128xf32, #tpu.memory_space<vmem>>, %arg8: memref<48x128xf32, #tpu.memory_space<vmem>>) attributes {dimension_semantics = [#tpu.dimension_semantics<parallel>, #tpu.dimension_semantics<arbitrary>], iteration_bounds = array<i64: 2, 2>, scalar_prefetch = 0 : i64, scratch_operands = 1 : i64, tpu.core_type = #tpu.core_type<tc>, window_params = [{transform_indices = @transform_0, window_bounds = array<i64: 48, 128>}, {transform_indices = @transform_1, window_bounds = array<i64: 128, 256>}, {transform_indices = @transform_2, window_bounds = array<i64: 1, 256>}, {transform_indices = @transform_3, window_bounds = array<i64: 256, 128>}, {pipeline_mode = #tpu.pipeline_mode<synchronous>, transform_indices = @transform_4, window_bounds = array<i64: 1, 128>}, {transform_indices = @transform_5, window_bounds = array<i64: 48, 128>}]} {
    %c0_i32 = arith.constant 0 : i32
    %0 = arith.cmpi eq, %arg1, %c0_i32 : i32
    %1 = arith.extui %0 : i1 to i32
    %c0_i32_0 = arith.constant 0 : i32
    %2 = arith.cmpi ne, %1, %c0_i32_0 : i32
    scf.if %2 {
      %c0_19 = arith.constant 0 : index
      %c0_20 = arith.constant 0 : index
      %32 = vector.load %arg6[%c0_19, %c0_20] : memref<1x128xf32, #tpu.memory_space<vmem>>, vector<1x128xf32>
      %33 = vector.shape_cast %32 : vector<1x128xf32> to vector<1x128xf32>
      %34 = vector.broadcast %33 : vector<1x128xf32> to vector<48x128xf32>
      %c0_21 = arith.constant 0 : index
      %c0_22 = arith.constant 0 : index
      %35 = vector.load %arg8[%c0_21, %c0_22] : memref<48x128xf32, #tpu.memory_space<vmem>>, vector<48x128xf32>
      tpu.vector_store %arg8[%c0_21, %c0_22], %34 {strides = array<i32>} : memref<48x128xf32, #tpu.memory_space<vmem>>, vector<48x128xf32>,
    } else {
    }
    %c0 = arith.constant 0 : index
    %c0_1 = arith.constant 0 : index
    %3 = vector.load %arg2[%c0, %c0_1] : memref<48x128xf32, #tpu.memory_space<vmem>>, vector<48x128xf32>
    %c0_2 = arith.constant 0 : index
    %c0_3 = arith.constant 0 : index
    %4 = vector.load %arg3[%c0_2, %c0_3] : memref<128x256xf32, #tpu.memory_space<vmem>>, vector<128x256xf32>
    %cst = arith.constant dense<0.000000e+00> : vector<48x256xf32>
    %5 = tpu.matmul %3, %4, %cst {dimension_numbers = #tpu.dot_dimension_numbers<[1], [0], [0], [1], [0, 0, 1, 1], [], []>} : vector<48x128xf32>, vector<128x256xf32>, vector<48x256xf32> -> vector<48x256xf32>
    %c0_4 = arith.constant 0 : index
    %c0_5 = arith.constant 0 : index
    %6 = vector.load %arg4[%c0_4, %c0_5] : memref<1x256xf32, #tpu.memory_space<vmem>>, vector<1x256xf32>
    %7 = vector.broadcast %6 : vector<1x256xf32> to vector<48x256xf32>
    %8 = arith.addf %5, %7 : vector<48x256xf32>
    %9 = arith.mulf %8, %8 : vector<48x256xf32>
    %10 = arith.mulf %9, %8 : vector<48x256xf32>
    %cst_6 = arith.constant 4.471500e-02 : f32
    %11 = vector.broadcast %cst_6 : f32 to vector<48x256xf32>
    %12 = arith.mulf %11, %10 : vector<48x256xf32>
    %13 = arith.addf %8, %12 : vector<48x256xf32>
    %cst_7 = arith.constant 1.59576917 : f32
    %14 = vector.broadcast %cst_7 : f32 to vector<48x256xf32>
    %15 = arith.mulf %14, %13 : vector<48x256xf32>
    %cst_8 = arith.constant 0.000000e+00 : f32
    %16 = vector.broadcast %cst_8 : f32 to vector<48x256xf32>
    %17 = arith.subf %16, %15 : vector<48x256xf32>
    %18 = math.exp %17 : vector<48x256xf32>
    %cst_9 = arith.constant 1.000000e+00 : f32
    %19 = vector.broadcast %cst_9 : f32 to vector<48x256xf32>
    %20 = arith.addf %19, %18 : vector<48x256xf32>
    %cst_10 = arith.constant 1.000000e+00 : f32
    %21 = vector.broadcast %cst_10 : f32 to vector<48x256xf32>
    %22 = arith.divf %21, %20 : vector<48x256xf32>
    %23 = arith.mulf %8, %22 : vector<48x256xf32>
    %c0_11 = arith.constant 0 : index
    %c0_12 = arith.constant 0 : index
    %24 = vector.load %arg8[%c0_11, %c0_12] : memref<48x128xf32, #tpu.memory_space<vmem>>, vector<48x128xf32>
    %c0_13 = arith.constant 0 : index
    %c0_14 = arith.constant 0 : index
    %25 = vector.load %arg5[%c0_13, %c0_14] : memref<256x128xf32, #tpu.memory_space<vmem>>, vector<256x128xf32>
    %cst_15 = arith.constant dense<0.000000e+00> : vector<48x128xf32>
    %26 = tpu.matmul %23, %25, %cst_15 {dimension_numbers = #tpu.dot_dimension_numbers<[1], [0], [0], [1], [0, 0, 1, 1], [], []>} : vector<48x256xf32>, vector<256x128xf32>, vector<48x128xf32> -> vector<48x128xf32>
    %27 = arith.addf %24, %26 : vector<48x128xf32>
    %c0_16 = arith.constant 0 : index
    %c0_17 = arith.constant 0 : index
    %28 = vector.load %arg8[%c0_16, %c0_17] : memref<48x128xf32, #tpu.memory_space<vmem>>, vector<48x128xf32>
    tpu.vector_store %arg8[%c0_16, %c0_17], %27 {strides = array<i32>} : memref<48x128xf32, #tpu.memory_space<vmem>>, vector<48x128xf32>,
    %c1_i32 = arith.constant 1 : i32
    %29 = arith.cmpi eq, %arg1, %c1_i32 : i32
    %30 = arith.extui %29 : i1 to i32
    %c0_i32_18 = arith.constant 0 : i32
    %31 = arith.cmpi ne, %30, %c0_i32_18 : i32
    scf.if %31 {
      %c0_19 = arith.constant 0 : index
      %c0_20 = arith.constant 0 : index
      %32 = vector.load %arg8[%c0_19, %c0_20] : memref<48x128xf32, #tpu.memory_space<vmem>>, vector<48x128xf32>
      %c0_21 = arith.constant 0 : index
      %c0_22 = arith.constant 0 : index
      %33 = vector.load %arg7[%c0_21, %c0_22] : memref<48x128xf32, #tpu.memory_space<vmem>>, vector<48x128xf32>
      tpu.vector_store %arg7[%c0_21, %c0_22], %32 {strides = array<i32>} : memref<48x128xf32, #tpu.memory_space<vmem>>, vector<48x128xf32>,
    } else {
    }
    return
  }
  func.func @transform_0(%arg0: i32, %arg1: i32) -> (i32, i32) {
    %c0_i32 = arith.constant 0 : i32
    %c0_i32_0 = arith.constant 0 : i32
    return %arg0, %c0_i32 : i32, i32
  }
  func.func @transform_1(%arg0: i32, %arg1: i32) -> (i32, i32) {
    %c0_i32 = arith.constant 0 : i32
    %c0_i32_0 = arith.constant 0 : i32
    return %c0_i32, %arg1 : i32, i32
  }
  func.func @transform_2(%arg0: i32, %arg1: i32) -> (i32, i32) {
    %c0_i32 = arith.constant 0 : i32
    %c0_i32_0 = arith.constant 0 : i32
    return %c0_i32, %arg1 : i32, i32
  }
  func.func @transform_3(%arg0: i32, %arg1: i32) -> (i32, i32) {
    %c0_i32 = arith.constant 0 : i32
    %c0_i32_0 = arith.constant 0 : i32
    return %arg1, %c0_i32 : i32, i32
  }
  func.func @transform_4(%arg0: i32, %arg1: i32) -> (i32, i32) {
    %c0_i32 = arith.constant 0 : i32
    %c0_i32_0 = arith.constant 0 : i32
    %c0_i32_1 = arith.constant 0 : i32
    return %c0_i32, %c0_i32_0 : i32, i32
  }
  func.func @transform_5(%arg0: i32, %arg1: i32) -> (i32, i32) {
    %c0_i32 = arith.constant 0 : i32
    %c0_i32_0 = arith.constant 0 : i32
    return %arg0, %c0_i32 : i32, i32
  }
}

</mosaic_0001>

<bundles_post_ra>
// kernel: mlp_forward.1
= control target key start
LH: loop header
LB: loop body
LE: loop exit
PB: predicated region body
PF: predicated region fallthrough
CT: control target
= control target key end

     0   :  { %s1863_s0 = inlined_call_operand.vmem [shape: f32[96,128], index: 0, kind: input, shape index: {}]   ;;  %s1864_s1 = inlined_call_operand.hbm [shape: f32[128,512], index: 1, kind: input, shape index: {}]   ;;  %s1865_s2 = inlined_call_operand.vmem [shape: f32[1,512], index: 2, kind: input, shape index: {}]   ;;  %s1866_s3 = inlined_call_operand.hbm [shape: f32[512,128], index: 3, kind: input, shape index: {}]   ;;  %s1867_s4 = inlined_call_operand.vmem [shape: f32[1,128], index: 4, kind: input, shape index: {}]   ;;  %s1868_s5 = inlined_call_operand.vmem [shape: f32[96,128], index: 5, kind: output, shape index: {}]  }
   0x1   :  { %1871 = sst [smem:[#allocation13_spill]] %s1864_s1 }
   0x2   :  { %10 = vsyncpa [#allocation4], 0 }
   0x3   :  { %12 = vsyncpa [#allocation4 + $0x1], 0 }
   0x4   :  { %13 = vsyncpa [#allocation6], 0 }
   0x5   :  { %15 = vsyncpa [#allocation6 + $0x1], 0  ;;  %s1351_s18 = smov 0   ;;  %s1353_s19 = smov 0  }
   0x6   :  { %s1355_s20 = smov 0   ;;  %s1357_s21 = smov 0  }
   0x7   :  { %s1359_s22 = smov 0   ;;  %s1361_s23 = smov 0  }
   0x8   :  { %s1363_s24 = smov 0   ;;  %s1365_s25 = smov 0  }
   0x9 LB: > { %1872 = sst [smem:[#allocation9_spill]] %s1310_s24  ;;  %s1032_s26 = sadd.s32 4294967295, %s1314_s25   ;;  %s1314_s25 = sphi %s1365_s25, %s21_s25   ;;  %s1310_s24 = sphi %s1363_s24, %s1889_s24   ;;  %s1306_s23 = sphi %s1361_s23, %s1894_s23   ;;  %s1302_s22 = sphi %s1359_s22, %s1887_s22   ;;  %s1298_s21 = sphi %s1357_s21, %s1893_s21   ;;  %s1294_s20 = sphi %s1355_s20, %s1892_s20   ;;  %s1290_s19 = sphi %s1353_s19, %s1891_s19   ;;  %s1286_s18 = sphi %s1351_s18, %s1890_s18  }
   0xa   : > { %s30_s27 = sadd.s32 1, %s1306_s23  ;;  %s33_s28 = sadd.s32 1, %s1310_s24 }
   0xb   : > { %p31_p0 = scmp.ge.s32.totalorder %s30_s27, 2  ;;  %s66_s29 = sadd.s32 1, %s1294_s20 }
   0xc   : > { %p73_p1 = scmp.ne.s32.totalorder %s1294_s20, %s1290_s19  ;;  %p74_p2 = scmp.eq.s32.totalorder %s1314_s25, 0 }
   0xd   : > { %s1896_s27 = smov (%p31_p0, %s30_s27), 0  ;;  %s1898_s28 = smov (!%p31_p0, %s33_s28), %s1310_s24 }
   0xe   : > { %1873 = sst [smem:[#allocation10_spill]] %s1896_s27  ;;  %s63_s30 = ssub.s32 %s1306_s23, %s1896_s27 }
   0xf   : > { %p35_p3 = scmp.ge.s32.totalorder %s1898_s28, 2  ;;  %p64_p4 = scmp.eq.s32.totalorder %s63_s30, 0 }
  0x10   : > { %p1401_p5 = por %p74_p2, %p73_p1  ;;  %p79_p6 = scmp.ne.s32.totalorder %s1290_s19, %s1286_s18 }
  0x11   : > { %s1900_s28 = smov (%p35_p3, %s1898_s28), 0  ;;  %p80_p7 = scmp.eq.s32.totalorder %s1032_s26, 0 }
  0x12   : > { %1875 = sst [smem:[#allocation11_spill]] %s1900_s28  ;;  %p1065_p8 = scmp.lt.s32.totalorder %s1314_s25, 4 }
  0x13   : > { %s1409_s7 = scalar_select %p64_p4, %s1294_s20, %s66_s29  }
  0x14   : > { %s1413_s8 = sand.u32 1, %s1294_s20   ;;  %p1415_p9 = por %p80_p7, %p79_p6 }
  0x15   : > { %1876 = sst [smem:[#allocation12_spill]] %s1409_s7  ;;  %s1036_s10 = sshll.u32 %s1413_s8, 8 }
  0x16   : > { %s1052_s11 = sshll.u32 %s1306_s23, 4  ;;  %s1878_s1 = sld [smem:[#allocation13_spill]] }
  0x17   : > { %s218_s16 = scalar_lea.vmem [#allocation3], %s1036_s10  ;;  %p1426_p10 = pnand %p1065_p8, %p1401_p5 }
  0x18   : > { %s226_s17 = sshll.u32 %s218_s16, 4  ;;  %p1042_p11 = scmp.ge.s32.totalorder %s1314_s25, 1  ;;  %s227_s17 = int_to_ptr.vmem [resolvable:$true] %s226_s17 }
  0x19   : > { %s215_s26 = scalar_lea.sflag [#allocation4], %s1413_s8  ;;  %s1316_s29 = smov 512  }
  0x1a   : > { %s1317_s30 = smov 256   ;;  %s1318_s28 = smov 16  }
  0x1b   : > { %p264_p12 = scmp.lt.s32.totalorder %s1314_s25, 5  ;;  %s248_s16 = scalar_lea.vmem [#allocation5], %s1036_s10 }
  0x1c   : > { %s223_s14 = scalar_lea.hbm %s1878_s1, %s1052_s11  ;;  %s1053_s11 = sshll.u32 %s1306_s23, 8 }
  0x1d   : > { %s224_s15 = sshll.u32 %s223_s14, 4  ;;  %p265_p13 = pnand %p1042_p11, %p264_p12  ;;  %s225_s15 = int_to_ptr.hbm [resolvable:$true] %s224_s15 }
  0x1e   : > { %1061 = dma.hbm_to_vmem [thread:$0]  (!%p1426_p10), %s225_s15, 4096, %s227_s17, %s215_s26, %s1316_s29, %s1317_s30, %s1318_s28  }
  0x1f   : > { %s253_s6 = scalar_lea.hbm %s1866_s3, %s1053_s11  ;;  %s256_s1 = sshll.u32 %s248_s16, 4  ;;  %s257_s1 = int_to_ptr.vmem [resolvable:$true] %s256_s1 }
  0x20   : > { %s254_s14 = sshll.u32 %s253_s6, 4  ;;  %s245_s27 = scalar_lea.sflag [#allocation6], %s1413_s8  ;;  %s255_s14 = int_to_ptr.hbm [resolvable:$true] %s254_s14 }
  0x21   : > { %s1319_s24 = smov 128   ;;  %s1320_s7 = smov 8  }
  0x22   : > { %1064 = dma.hbm_to_vmem [thread:$0]  (!%p1426_p10), %s255_s14, 4096, %s257_s1, %s245_s27, %s1319_s24, %s1319_s24, %s1320_s7  }
  0x23   : > { %268 = sbr.rel (%p265_p13) target bundleno = 456 (0x1c8), region = 40  ;;  %s270_s28 = sand.u32 (!%p265_p13), 1, %s1290_s19  }
  0x24   : > { %s1043_s15 = sshll.u32 (!%p265_p13), %s270_s28, 8  ;;  %s271_s17 = scalar_lea.sflag (!%p265_p13), [#allocation4], %s270_s28 }
  0x25   : > { %s1443_s26 = scalar_lea.vmem (!%p265_p13), [#allocation3], %s1043_s15 }
  0x28   : > { %1277 = dma.done.wait (%p1415_p9), %s271_s17, 4096  }
  0x29   : > { %1279 = vsyncadd (%p1415_p9), %s271_s17, 4294963200  ;;  %s281_s10 = scalar_lea.sflag [#allocation6], %s270_s28  ;;  %s1449_s8 = scalar_lea.vmem [#allocation5], %s1043_s15 }
  0x2a   : > { %1281 = dma.done.wait (%p1415_p9), %s281_s10, 4096  }
  0x2b   : > { %1283 = vsyncadd (%p1415_p9), %s281_s10, 4294963200  ;;  %s326_s1 = smul.u32 6, %s1302_s22  ;;  %s1046_s24 = sshll.u32 %s1298_s21, 1 }
  0x2c   : > { %p334_p0 = scmp.lt.s32.totalorder %s1046_s24, 3  ;;  %p1048_p2 = scmp.ne.s32.totalorder %s1298_s21, 0 }
  0x2d   : > { %p327_p1 = scmp.lt.s32.totalorder %s326_s1, 11 }
  0x2e   : > { %s1902_s24 = smov (!%p334_p0, %s1046_s24), 3  ;;  %348 = sbr.rel (%p1048_p2) target bundleno = 58 (0x3a), region = 52 }
  0x2f   : > { %s1904_s1 = smov (!%p327_p1, %s326_s1), 11  ;;  %s336_s18 = scalar_lea.vmem %s1865_s2, %s1902_s24 }
  0x30   : > { %s1045_s29 = sshll.u32 %s1904_s1, 3 }
  0x31   : > { %s1466_s9 = scalar_lea.vmem %s1863_s0, %s1045_s29  ;;  %s1471_s22 = scalar_lea.vmem %s1868_s5, %s1045_s29 }
  0x33   : > { %v1135_v0 = vld [vmem:[%s1867_s4] ss:$0 sm:$0xff] }
  0x34   : > { %353 = vst [vmem:[#allocation2 + $0x28] sm:$0xff] %v1135_v0 }
  0x35   : > { %354 = vst [vmem:[#allocation2 + $0x10] sm:$0xff] %v1135_v0 }
  0x36   : > { %355 = vst [vmem:[#allocation2 + $0x8] sm:$0xff] %v1135_v0 }
  0x37   : > { %356 = vst [vmem:[#allocation2] sm:$0xff] %v1135_v0 }
  0x38   : > { %357 = vst [vmem:[#allocation2 + $0x18] sm:$0xff] %v1135_v0 }
  0x39   : > { %358 = vst [vmem:[#allocation2 + $0x20] sm:$0xff] %v1135_v0 }
  0x3a PF: > { %v395_v1 = vld [vmem:[%s1443_s26 + $0xf0] sm:$0xff]  ;;  %v396_v2 = vld [vmem:[%s1443_s26 + $0xf8] sm:$0xff]  ;;  %v393_v3 = vld [vmem:[%s1443_s26 + $0xe0] sm:$0xff]  ;;  %p1049_p3 = scmp.ne.s32.totalorder %s1298_s21, 1 }
  0x3b   : > { %403 = vmatpush.msra.mxu0 %v395_v1  ;;  %438 = vmatpush.msra.mxu1 %v396_v2  ;;  %v394_v4 = vld [vmem:[%s1443_s26 + $0xe8] sm:$0xff]  ;;  %v391_v5 = vld [vmem:[%s1443_s26 + $0xd0] sm:$0xff]  ;;  %v392_v6 = vld [vmem:[%s1443_s26 + $0xd8] sm:$0xff] }
  0x3c   : > { %v389_v7 = vld [vmem:[%s1443_s26 + $0xc0] sm:$0xff]  ;;  %v390_v8 = vld [vmem:[%s1443_s26 + $0xc8] sm:$0xff]  ;;  %v387_v9 = vld [vmem:[%s1443_s26 + $0xb0] sm:$0xff] }
  0x3d   : > { %404 = vmatpush.msra.mxu0 %v393_v3  ;;  %439 = vmatpush.msra.mxu1 %v394_v4  ;;  %v388_v10 = vld [vmem:[%s1443_s26 + $0xb8] sm:$0xff]  ;;  %v385_v11 = vld [vmem:[%s1443_s26 + $0xa0] sm:$0xff]  ;;  %v386_v12 = vld [vmem:[%s1443_s26 + $0xa8] sm:$0xff] }
  0x3e   : > { %v383_v13 = vld [vmem:[%s1443_s26 + $0x90] sm:$0xff]  ;;  %v384_v14 = vld [vmem:[%s1443_s26 + $0x98] sm:$0xff]  ;;  %v381_v15 = vld [vmem:[%s1443_s26 + $0x80] sm:$0xff] }
  0x3f   : > { %405 = vmatpush.msra.mxu0 %v391_v5  ;;  %440 = vmatpush.msra.mxu1 %v392_v6  ;;  %v382_v16 = vld [vmem:[%s1443_s26 + $0x88] sm:$0xff]  ;;  %v379_v17 = vld [vmem:[%s1443_s26 + $0x70] sm:$0xff]  ;;  %v380_v18 = vld [vmem:[%s1443_s26 + $0x78] sm:$0xff] }
  0x40   : > { %v377_v19 = vld [vmem:[%s1443_s26 + $0x60] sm:$0xff]  ;;  %v378_v20 = vld [vmem:[%s1443_s26 + $0x68] sm:$0xff]  ;;  %v375_v21 = vld [vmem:[%s1443_s26 + $0x50] sm:$0xff] }
  0x41   : > { %406 = vmatpush.msra.mxu0 %v389_v7  ;;  %441 = vmatpush.msra.mxu1 %v390_v8  ;;  %v376_v22 = vld [vmem:[%s1443_s26 + $0x58] sm:$0xff]  ;;  %v373_v23 = vld [vmem:[%s1443_s26 + $0x40] sm:$0xff]  ;;  %v374_v24 = vld [vmem:[%s1443_s26 + $0x48] sm:$0xff] }
  0x42   : > { %v371_v25 = vld [vmem:[%s1443_s26 + $0x30] sm:$0xff]  ;;  %v372_v26 = vld [vmem:[%s1443_s26 + $0x38] sm:$0xff]  ;;  %v369_v27 = vld [vmem:[%s1443_s26 + $0x20] sm:$0xff] }
  0x43   : > { %407 = vmatpush.msra.mxu0 %v387_v9  ;;  %442 = vmatpush.msra.mxu1 %v388_v10  ;;  %v370_v28 = vld [vmem:[%s1443_s26 + $0x28] sm:$0xff]  ;;  %v367_v29 = vld [vmem:[%s1443_s26 + $0x10] sm:$0xff]  ;;  %v368_v30 = vld [vmem:[%s1443_s26 + $0x18] sm:$0xff] }
  0x44   : > { %v365_v31 = vld [vmem:[%s1443_s26] sm:$0xff]  ;;  %v366_v32 = vld [vmem:[%s1443_s26 + $0x8] sm:$0xff]  ;;  %v359_v33 = vld [vmem:[%s1466_s9] sm:$0xff] }
  0x45   : > { %408 = vmatpush.msra.mxu0 %v385_v11  ;;  %443 = vmatpush.msra.mxu1 %v386_v12  ;;  %v360_v34 = vld [vmem:[%s1466_s9 + $0x8] sm:$0xff]  ;;  %v361_v35 = vld [vmem:[%s1466_s9 + $0x10] sm:$0xff]  ;;  %v362_v36 = vld [vmem:[%s1466_s9 + $0x18] sm:$0xff] }
  0x46   : > { %v363_v37 = vld [vmem:[%s1466_s9 + $0x20] sm:$0xff]  ;;  %v364_v38 = vld [vmem:[%s1466_s9 + $0x28] sm:$0xff]  ;;  %v792_v43 = vld [vmem:[%s1449_s8 + $0x68] sm:$0xff] }
  0x47   : > { %409 = vmatpush.msra.mxu0 %v383_v13  ;;  %444 = vmatpush.msra.mxu1 %v384_v14  ;;  %v794_v39 = vld [vmem:[%s1449_s8 + $0x78] sm:$0xff]  ;;  %v793_v41 = vld [vmem:[%s1449_s8 + $0x70] sm:$0xff]  ;;  %v808_v44 = vld [vmem:[%s1449_s8 + $0xe8] sm:$0xff] }
  0x48   : > { %v810_v40 = vld [vmem:[%s1449_s8 + $0xf8] sm:$0xff]  ;;  %811 = vmatpush.msra.mxu2 %v794_v39  ;;  %v809_v42 = vld [vmem:[%s1449_s8 + $0xf0] sm:$0xff]  ;;  %v791_v45 = vld [vmem:[%s1449_s8 + $0x60] sm:$0xff] }
  0x49   : > { %410 = vmatpush.msra.mxu0 %v381_v15  ;;  %445 = vmatpush.msra.mxu1 %v382_v16  ;;  %v807_v46 = vld [vmem:[%s1449_s8 + $0xe0] sm:$0xff]  ;;  %v790_v47 = vld [vmem:[%s1449_s8 + $0x58] sm:$0xff]  ;;  %v397_v49 = vld [vmem:[%s336_s18] sm:$0x3] }
  0x4a   : > { %846 = vmatpush.msra.mxu3 %v810_v40  ;;  %812 = vmatpush.msra.mxu2 %v793_v41  ;;  %v806_v48 = vld [vmem:[%s1449_s8 + $0xd8] sm:$0xff]  ;;  %v789_v50 = vld [vmem:[%s1449_s8 + $0x50] sm:$0xff]  ;;  %v1532_v52 = vperm.slane %v397_v49, 0  ;;  %v1534_v53 = vperm.slane %v397_v49, 1  ;;  %v788_v54 = vld [vmem:[%s1449_s8 + $0x48] sm:$0xff] }
  0x4b   : > { %411 = vmatpush.msra.mxu0 %v379_v17  ;;  %446 = vmatpush.msra.mxu1 %v380_v18  ;;  %v805_v51 = vld [vmem:[%s1449_s8 + $0xd0] sm:$0xff]  ;;  %v804_v55 = vld [vmem:[%s1449_s8 + $0xc8] sm:$0xff]  ;;  %v787_v56 = vld [vmem:[%s1449_s8 + $0x40] sm:$0xff] }
  0x4c   : > { %847 = vmatpush.msra.mxu3 %v809_v42  ;;  %813 = vmatpush.msra.mxu2 %v792_v43  ;;  %v803_v57 = vld [vmem:[%s1449_s8 + $0xc0] sm:$0xff]  ;;  %v786_v62 = vld [vmem:[%s1449_s8 + $0x38] sm:$0xff]  ;;  %v785_v2 = vld [vmem:[%s1449_s8 + $0x30] sm:$0xff] }
  0x4d   : > { %412 = vmatpush.msra.mxu0 %v377_v19  ;;  %447 = vmatpush.msra.mxu1 %v378_v20  ;;  %v802_v63 = vld [vmem:[%s1449_s8 + $0xb8] sm:$0xff]  ;;  %v801_v3 = vld [vmem:[%s1449_s8 + $0xb0] sm:$0xff]  ;;  %v784_v6 = vld [vmem:[%s1449_s8 + $0x28] sm:$0xff] }
  0x4e   : > { %848 = vmatpush.msra.mxu3 %v808_v44  ;;  %814 = vmatpush.msra.mxu2 %v791_v45  ;;  %v800_v7 = vld [vmem:[%s1449_s8 + $0xa8] sm:$0xff]  ;;  %v783_v10 = vld [vmem:[%s1449_s8 + $0x20] sm:$0xff]  ;;  %v782_v18 = vld [vmem:[%s1449_s8 + $0x18] sm:$0xff] }
  0x4f   : > { %413 = vmatpush.msra.mxu0 %v375_v21  ;;  %448 = vmatpush.msra.mxu1 %v376_v22  ;;  %v799_v11 = vld [vmem:[%s1449_s8 + $0xa0] sm:$0xff]  ;;  %v798_v19 = vld [vmem:[%s1449_s8 + $0x98] sm:$0xff] }
  0x50   : > { %849 = vmatpush.msra.mxu3 %v807_v46  ;;  %815 = vmatpush.msra.mxu2 %v790_v47  ;;  %v795_v39 = vld [vmem:[%s1449_s8 + $0x80] sm:$0xff] }
  0x51   : > { %414 = vmatpush.msra.mxu0 %v373_v23  ;;  %449 = vmatpush.msra.mxu1 %v374_v24  ;;  %v781_v24 = vld [vmem:[%s1449_s8 + $0x10] sm:$0xff] }
  0x52   : > { %850 = vmatpush.msra.mxu3 %v806_v48  ;;  %816 = vmatpush.msra.mxu2 %v789_v50 }
  0x53   : > { %415 = vmatpush.msra.mxu0 %v371_v25  ;;  %450 = vmatpush.msra.mxu1 %v372_v26  ;;  %v797_v25 = vld [vmem:[%s1449_s8 + $0x90] sm:$0xff] }
  0x54   : > { %851 = vmatpush.msra.mxu3 %v805_v51  ;;  %817 = vmatpush.msra.mxu2 %v788_v54 }
  0x55   : > { %416 = vmatpush.msra.mxu0 %v369_v27  ;;  %451 = vmatpush.msra.mxu1 %v370_v28 }
  0x56   : > { %852 = vmatpush.msra.mxu3 %v804_v55  ;;  %818 = vmatpush.msra.mxu2 %v787_v56 }
  0x57   : > { %417 = vmatpush.msra.mxu0 %v367_v29  ;;  %452 = vmatpush.msra.mxu1 %v368_v30  ;;  %v780_v30 = vld [vmem:[%s1449_s8 + $0x8] sm:$0xff] }
  0x58   : > { %853 = vmatpush.msra.mxu3 %v803_v57  ;;  %819 = vmatpush.msra.mxu2 %v786_v62 }
  0x59   : > { %418 = vmatpush.msra.mxu0 %v365_v31  ;;  %453 = vmatpush.msra.mxu1 %v366_v32  ;;  %v796_v31 = vld [vmem:[%s1449_s8 + $0x88] sm:$0xff] }
  0x5a   : > { %419 = vmatmul.f32.vlgmr.msra.gmra.mxu0 %v359_v33  ;;  %454 = vmatmul.f32.vlgmr.msra.gmra.mxu1 %v359_v33 }
  0x5b   : > { %854 = vmatpush.msra.mxu3 %v802_v63  ;;  %820 = vmatpush.msra.mxu2 %v785_v2 }
  0x5d   : > { %855 = vmatpush.msra.mxu3 %v801_v3  ;;  %821 = vmatpush.msra.mxu2 %v784_v6 }
  0x5f   : > { %856 = vmatpush.msra.mxu3 %v800_v7  ;;  %822 = vmatpush.msra.mxu2 %v783_v10 }
  0x61   : > { %857 = vmatpush.msra.mxu3 %v799_v11  ;;  %823 = vmatpush.msra.mxu2 %v782_v18 }
  0x62   : > { %422 = vmatmul.f32.gmra.mxu0 %v360_v34  ;;  %457 = vmatmul.f32.gmra.mxu1 %v360_v34 }
  0x63   : > { %858 = vmatpush.msra.mxu3 %v798_v19  ;;  %824 = vmatpush.msra.mxu2 %v781_v24 }
  0x65   : > { %859 = vmatpush.msra.mxu3 %v797_v25  ;;  %825 = vmatpush.msra.mxu2 %v780_v30 }
  0x67   : > { %860 = vmatpush.msra.mxu3 %v796_v31 }
  0x69   : > { %861 = vmatpush.msra.mxu3 %v795_v39 }
  0x6a   : > { %425 = vmatmul.f32.gmra.mxu0 %v361_v35  ;;  %460 = vmatmul.f32.gmra.mxu1 %v361_v35 }
  0x72   : > { %428 = vmatmul.f32.gmra.mxu0 %v362_v36  ;;  %463 = vmatmul.f32.gmra.mxu1 %v362_v36 }
  0x7a   : > { %431 = vmatmul.f32.gmra.mxu0 %v363_v37  ;;  %466 = vmatmul.f32.gmra.mxu1 %v363_v37 }
  0x82   : > { %434 = vmatmul.f32.gmra.mxu0 %v364_v38  ;;  %469 = vmatmul.f32.gmra.mxu1 %v364_v38  ;;  %v779_v38 = vld [vmem:[%s1449_s8] sm:$0xff] }
  0x83   : > { %826 = vmatpush.msra.mxu2 %v779_v38 }
  0xd7   : > { %v420_v58 = vpop.f32.mrf.mxu0  ;;  %v455_v59 = vpop.f32.mrf.mxu1 }
  0xd8   : > { %v1541_v60 = vadd.f32 %v420_v58, %v1532_v52  ;;  %v1544_v61 = vadd.f32 %v455_v59, %v1534_v53 }
  0xda   : > { %v473_v0 = vmul.f32 %v1541_v60, %v1541_v60  ;;  %v474_v1 = vmul.f32 %v1544_v61, %v1544_v61 }
  0xdc   : > { %v485_v4 = vmul.f32 %v473_v0, %v1541_v60  ;;  %v486_v5 = vmul.f32 %v474_v1, %v1544_v61 }
  0xde   : > { %v497_v8 = vmul.f32 0.044715, %v485_v4  ;;  %v498_v9 = vmul.f32 0.044715, %v486_v5 }
  0xdf   : > { %v423_v12 = vpop.f32.mrf.mxu0  ;;  %v458_v13 = vpop.f32.mrf.mxu1 }
  0xe0   : > { %v509_v14 = vadd.f32 %v497_v8, %v1541_v60  ;;  %v510_v15 = vadd.f32 %v498_v9, %v1544_v61  ;;  %v1563_v16 = vadd.f32 %v423_v12, %v1532_v52  ;;  %v1566_v17 = vadd.f32 %v458_v13, %v1534_v53 }
  0xe2   : > { %v521_v20 = vmul.f32 1.5957692, %v509_v14  ;;  %v522_v21 = vmul.f32 1.5957692, %v510_v15  ;;  %v475_v22 = vmul.f32 %v1563_v16, %v1563_v16  ;;  %v476_v23 = vmul.f32 %v1566_v17, %v1566_v17 }
  0xe4   : > { %v533_v26 = vsub.f32 0.0, %v521_v20  ;;  %v534_v27 = vsub.f32 0.0, %v522_v21  ;;  %v487_v28 = vmul.f32 %v475_v22, %v1563_v16  ;;  %v488_v29 = vmul.f32 %v476_v23, %v1566_v17 }
  0xe6   : > { %v545_v32 = vmul.f32 1.442695, %v533_v26  ;;  %v547_v33 = vmul.f32 1.442695, %v534_v27  ;;  %v499_v34 = vmul.f32 0.044715, %v487_v28 }
  0xe7   : > { %v500_v35 = vmul.f32 0.044715, %v488_v29  ;;  %v426_v36 = vpop.f32.mrf.mxu0  ;;  %v461_v37 = vpop.f32.mrf.mxu1 }
  0xe8   : > { %1136 = vpow2.f32 %v545_v32  ;;  %v511_v40 = vadd.f32 %v499_v34, %v1563_v16  ;;  %v1584_v41 = vadd.f32 %v426_v36, %v1532_v52  ;;  %v1587_v42 = vadd.f32 %v461_v37, %v1534_v53 }
  0xe9   : > { %1138 = vpow2.f32 %v547_v33  ;;  %v512_v43 = vadd.f32 %v500_v35, %v1566_v17 }
  0xea   : > { %v523_v44 = vmul.f32 1.5957692, %v511_v40  ;;  %v477_v45 = vmul.f32 %v1584_v41, %v1584_v41  ;;  %v478_v46 = vmul.f32 %v1587_v42, %v1587_v42 }
  0xeb   : > { %v524_v47 = vmul.f32 1.5957692, %v512_v43 }
  0xec   : > { %v535_v48 = vsub.f32 0.0, %v523_v44  ;;  %v489_v49 = vmul.f32 %v477_v45, %v1584_v41  ;;  %v490_v50 = vmul.f32 %v478_v46, %v1587_v42 }
  0xed   : > { %v536_v51 = vsub.f32 0.0, %v524_v47 }
  0xee   : > { %v1137_v54 = vpop.eup %1136  ;;  %v549_v55 = vmul.f32 1.442695, %v535_v48  ;;  %v501_v56 = vmul.f32 0.044715, %v489_v49  ;;  %v502_v57 = vmul.f32 0.044715, %v490_v50 }
  0xef   : > { %v1139_v58 = vpop.eup %1138  ;;  %v1596_v59 = vadd.f32 1.0, %v1137_v54  ;;  %v551_v62 = vmul.f32 1.442695, %v536_v51  ;;  %v429_v63 = vpop.f32.mrf.mxu0 }
  0xf0   : > { %v464_v0 = vpop.f32.mrf.mxu1  ;;  %v1598_v1 = vadd.f32 1.0, %v1139_v58  ;;  %1140 = vpow2.f32 %v549_v55  ;;  %v513_v2 = vadd.f32 %v501_v56, %v1584_v41  ;;  %v514_v3 = vadd.f32 %v502_v57, %v1587_v42 }
  0xf1   : > { %1142 = vrcp.f32 %v1596_v59  ;;  %v1604_v4 = vadd.f32 %v429_v63, %v1532_v52  ;;  %v1607_v5 = vadd.f32 %v464_v0, %v1534_v53  ;;  %v592_v10 = vand.u32 2147483648, %v1596_v59 }
  0xf2   : > { %1144 = vrcp.f32 %v1598_v1  ;;  %v525_v6 = vmul.f32 1.5957692, %v513_v2  ;;  %v526_v7 = vmul.f32 1.5957692, %v514_v3  ;;  %v590_v20 = vand.u32 2147483647, %v1596_v59 }
  0xf3   : > { %1146 = vpow2.f32 %v551_v62  ;;  %v479_v8 = vmul.f32 %v1604_v4, %v1604_v4  ;;  %v480_v9 = vmul.f32 %v1607_v5, %v1607_v5  ;;  %vm586_vm0 = vweird.f32 %v1596_v59 }
  0xf4   : > { %v537_v11 = vsub.f32 0.0, %v525_v6  ;;  %v538_v12 = vsub.f32 0.0, %v526_v7  ;;  %v593_v27 = vor.u32 1.1754944e-38, %v592_v10  ;;  %v605_v35 = vand.u32 2147483647, %v1598_v1 }
  0xf5   : > { %v491_v13 = vmul.f32 %v479_v8, %v1604_v4  ;;  %v492_v14 = vmul.f32 %v480_v9, %v1607_v5  ;;  %v607_v36 = vand.u32 2147483648, %v1598_v1  ;;  %vm1643_vm1 = vcmp.eq.f32.partialorder %v590_v20, 8.507059e+37 }
  0xf6   : > { %v1141_v15 = vpop.eup %1140  ;;  %v553_v18 = vmul.f32 1.442695, %v537_v11  ;;  %v555_v19 = vmul.f32 1.442695, %v538_v12  ;;  %vm601_vm2 = vweird.f32 %v1598_v1  ;;  %vm1655_vm4 = vcmp.eq.f32.partialorder %v605_v35, 8.507059e+37 }
  0xf7   : > { %v1618_v21 = vpop.eup %1142  ;;  %v1620_v22 = vadd.f32 1.0, %v1141_v15  ;;  %v503_v23 = vmul.f32 0.044715, %v491_v13  ;;  %v504_v24 = vmul.f32 0.044715, %v492_v14  ;;  %v432_v25 = vpop.f32.mrf.mxu0  ;;  %v608_v14 = vor.u32 1.1754944e-38, %v607_v36 }
  0xf8   : > { %v467_v26 = vpop.f32.mrf.mxu1  ;;  %v1623_v28 = vpop.eup %1144  ;;  %1148 = vpow2.f32 %v553_v18  ;;  %v1626_v29 = vadd.f32 %v432_v25, %v1532_v52  ;;  %v582_v31 = vmul.f32 %v1618_v21, %v1596_v59  ;;  %vm587_vm3 = vweird.f32 %v1618_v21 }
  0xf9   : > { %v1629_v30 = vadd.f32 %v467_v26, %v1534_v53  ;;  %v1147_v32 = vpop.eup %1146  ;;  %v515_v33 = vadd.f32 %v503_v23, %v1604_v4  ;;  %v516_v34 = vadd.f32 %v504_v24, %v1607_v5  ;;  %1150 = vpow2.f32 %v555_v19  ;;  %vm588_vm6 = vmor %vm586_vm0, %vm587_vm3 }
  0xfa   : > { %v1637_v37 = vadd.f32 1.0, %v1147_v32  ;;  %v481_v38 = vmul.f32 %v1626_v29, %v1626_v29  ;;  %v583_v45 = vsub.f32 1.0, %v582_v31  ;;  %v597_v46 = vmul.f32 %v1623_v28, %v1598_v1 }
  0xfb   : > { %v482_v39 = vmul.f32 %v1629_v30, %v1629_v30  ;;  %v527_v43 = vmul.f32 1.5957692, %v515_v33  ;;  %v528_v44 = vmul.f32 1.5957692, %v516_v34  ;;  %1152 = vrcp.f32 %v1620_v22 }
  0xfc   : > { %v493_v47 = vmul.f32 %v481_v38, %v1626_v29  ;;  %v584_v51 = vmul.f32 %v1618_v21, %v583_v45  ;;  %v598_v54 = vsub.f32 1.0, %v597_v46  ;;  %1154 = vrcp.f32 %v1637_v37 }
  0xfd   : > { %v494_v48 = vmul.f32 %v482_v39, %v1629_v30  ;;  %v539_v49 = vsub.f32 0.0, %v527_v43  ;;  %v540_v50 = vsub.f32 0.0, %v528_v44  ;;  %vm602_vm5 = vweird.f32 %v1623_v28 }
  0xfe   : > { %v1149_v56 = vpop.eup %1148  ;;  %v505_v57 = vmul.f32 0.044715, %v493_v47  ;;  %v585_v6 = vadd.f32 %v1618_v21, %v584_v51  ;;  %v599_v13 = vmul.f32 %v1623_v28, %v598_v54  ;;  %vm603_vm7 = vmor %vm601_vm2, %vm602_vm5  ;;  %v622_v45 = vand.u32 2147483648, %v1620_v22 }
  0xff   : > { %v506_v58 = vmul.f32 0.044715, %v494_v48  ;;  %v1661_v62 = vadd.f32 1.0, %v1149_v56  ;;  %v557_v63 = vmul.f32 1.442695, %v539_v49  ;;  %v435_v2 = vpop.f32.mrf.mxu0  ;;  %v1151_v7 = vpop.eup %1150  ;;  %vm616_vm9 = vweird.f32 %v1620_v22 }
 0x100   : > { %v559_v0 = vmul.f32 1.442695, %v540_v50  ;;  %v470_v3 = vpop.f32.mrf.mxu1  ;;  %v517_v8 = vadd.f32 %v505_v57, %v1626_v29  ;;  %v1667_v10 = vadd.f32 %v435_v2, %v1532_v52  ;;  %v589_v12 = vsel %vm588_vm6, %v1618_v21, %v585_v6 }
 0x101   : > { %v518_v9 = vadd.f32 %v506_v58, %v1629_v30  ;;  %v1670_v11 = vadd.f32 %v470_v3, %v1534_v53  ;;  %1156 = vrcp.f32 %v1661_v62  ;;  %v1153_v15 = vpop.eup %1152  ;;  %v1681_v19 = vadd.f32 1.0, %v1151_v7 }
 0x102   : > { %1158 = vpow2.f32 %v557_v63  ;;  %v529_v18 = vmul.f32 1.5957692, %v517_v8  ;;  %v483_v53 = vmul.f32 %v1667_v10, %v1667_v10  ;;  %v594_v20 = vsel %vm1643_vm1, %v593_v27, %v589_v12  ;;  %v1688_v23 = vpop.eup %1154 }
 0x103   : > { %v530_v52 = vmul.f32 1.5957692, %v518_v9  ;;  %v484_v59 = vmul.f32 %v1670_v11, %v1670_v11  ;;  %v600_v21 = vadd.f32 %v1623_v28, %v599_v13  ;;  %1160 = vpow2.f32 %v559_v0 }
 0x104   : > { %v541_v24 = vsub.f32 0.0, %v529_v18  ;;  %v495_v26 = vmul.f32 %v483_v53, %v1667_v10  ;;  %v761_v32 = vmul.f32 %v594_v20, %v1541_v60  ;;  %v612_v33 = vmul.f32 %v1153_v15, %v1620_v22 }
 0x105   : > { %v542_v25 = vsub.f32 0.0, %v530_v52  ;;  %v496_v31 = vmul.f32 %v484_v59, %v1670_v11  ;;  %v604_v27 = vsel %vm603_vm7, %v1623_v28, %v600_v21  ;;  %vm617_vm8 = vweird.f32 %v1153_v15 }
 0x106   : > { %v561_v34 = vmul.f32 1.442695, %v541_v24  ;;  %v507_v36 = vmul.f32 0.044715, %v495_v26  ;;  %v609_v38 = vsel %vm1655_vm4, %v608_v14, %v604_v27  ;;  %827 = vmatmul.f32.vlgmr.msra.gmra.mxu2 %v761_v32  ;;  %v613_v43 = vsub.f32 1.0, %v612_v33  ;;  %vm618_vm11 = vmor %vm616_vm9, %vm617_vm8 }
 0x107   : > { %v563_v35 = vmul.f32 1.442695, %v542_v25  ;;  %v1701_v39 = vpop.eup %1156  ;;  %v508_v40 = vmul.f32 0.044715, %v496_v31  ;;  %v762_v1 = vmul.f32 %v609_v38, %v1544_v61  ;;  %v620_v28 = vand.u32 2147483647, %v1620_v22 }
 0x108   : > { %v1159_v44 = vpop.eup %1158  ;;  %1162 = vpow2.f32 %v561_v34  ;;  %v519_v60 = vadd.f32 %v507_v36, %v1667_v10  ;;  %v614_v48 = vmul.f32 %v1153_v15, %v613_v43  ;;  %v627_v50 = vmul.f32 %v1688_v23, %v1637_v37 }
 0x109   : > { %v1707_v46 = vadd.f32 1.0, %v1159_v44  ;;  %1164 = vpow2.f32 %v563_v35  ;;  %v520_v47 = vadd.f32 %v508_v40, %v1670_v11  ;;  %862 = vmatmul.f32.vlgmr.msra.gmra.mxu3 %v762_v1  ;;  %v1161_v49 = vpop.eup %1160  ;;  %vm621_vm10 = vcmp.eq.f32.partialorder %v620_v28, 8.507059e+37 }
 0x10a   : > { %1166 = vrcp.f32 %v1681_v19  ;;  %v531_v61 = vmul.f32 1.5957692, %v519_v60  ;;  %v1714_v51 = vadd.f32 1.0, %v1161_v49  ;;  %v615_v55 = vadd.f32 %v1153_v15, %v614_v48 }
 0x10b   : > { %v532_v54 = vmul.f32 1.5957692, %v520_v47  ;;  %1168 = vrcp.f32 %v1707_v46  ;;  %v623_v57 = vor.u32 1.1754944e-38, %v622_v45  ;;  %v628_v58 = vsub.f32 1.0, %v627_v50 }
 0x10c   : > { %v543_v56 = vsub.f32 0.0, %v531_v61  ;;  %v619_v0 = vsel %vm618_vm11, %v1153_v15, %v615_v55  ;;  %vm632_vm12 = vweird.f32 %v1688_v23  ;;  %v635_v22 = vand.u32 2147483647, %v1637_v37 }
 0x10d   : > { %v544_v63 = vsub.f32 0.0, %v532_v54  ;;  %v624_v6 = vsel %vm621_vm10, %v623_v57, %v619_v0  ;;  %v629_v7 = vmul.f32 %v1688_v23, %v628_v58  ;;  %v637_v8 = vand.u32 2147483648, %v1637_v37 }
 0x10e   : > { %v1163_v2 = vpop.eup %1162  ;;  %v565_v3 = vmul.f32 1.442695, %v543_v56  ;;  %1170 = vrcp.f32 %v1714_v51  ;;  %v763_v14 = vmul.f32 %v624_v6, %v1563_v16  ;;  %vm631_vm13 = vweird.f32 %v1637_v37 }
 0x10f   : > { %v1165_v9 = vpop.eup %1164  ;;  %v1723_v12 = vadd.f32 1.0, %v1163_v2  ;;  %v567_v13 = vmul.f32 1.442695, %v544_v63  ;;  %v630_v52 = vadd.f32 %v1688_v23, %v629_v7  ;;  %vm633_vm14 = vmor %vm631_vm13, %vm632_vm12  ;;  %vm636_vm15 = vcmp.eq.f32.partialorder %v635_v22, 8.507059e+37 }
 0x110   : > { %v1167_v15 = vpop.eup %1166  ;;  %v1726_v18 = vadd.f32 1.0, %v1165_v9  ;;  %1172 = vpow2.f32 %v565_v3  ;;  %830 = vmatmul.f32.gmra.mxu2 %v763_v14  ;;  %v638_v53 = vor.u32 1.1754944e-38, %v637_v8  ;;  %v642_v59 = vmul.f32 %v1701_v39, %v1661_v62 }
 0x111   : > { %1174 = vrcp.f32 %v1723_v12  ;;  %v1735_v16 = vpop.eup %1168  ;;  %v634_v20 = vsel %vm633_vm14, %v1688_v23, %v630_v52  ;;  %vm646_vm0 = vweird.f32 %v1661_v62  ;;  %v650_v21 = vand.u32 2147483647, %v1661_v62 }
 0x112   : > { %v652_v37 = vand.u32 2147483648, %v1661_v62  ;;  %1176 = vpow2.f32 %v567_v13  ;;  %v639_v24 = vsel %vm636_vm15, %v638_v53, %v634_v20  ;;  %v643_v25 = vsub.f32 1.0, %v642_v59 }
 0x113   : > { %v657_v26 = vmul.f32 %v1167_v15, %v1681_v19  ;;  %1178 = vrcp.f32 %v1726_v18  ;;  %v764_v31 = vmul.f32 %v639_v24, %v1566_v17  ;;  %vm647_vm1 = vweird.f32 %v1701_v39 }
 0x114   : > { %vm1745_vm2 = vcmp.eq.f32.partialorder %v650_v21, 8.507059e+37  ;;  %v1749_v23 = vpop.eup %1170  ;;  %v644_v27 = vmul.f32 %v1701_v39, %v643_v25  ;;  %v653_v33 = vor.u32 1.1754944e-38, %v652_v37  ;;  %v665_v35 = vand.u32 2147483647, %v1681_v19  ;;  %vm648_vm6 = vmor %vm646_vm0, %vm647_vm1 }
 0x115   : > { %v658_v34 = vsub.f32 1.0, %v657_v26  ;;  %865 = vmatmul.f32.gmra.mxu3 %v764_v31  ;;  %vm661_vm3 = vweird.f32 %v1681_v19  ;;  %vm662_vm4 = vweird.f32 %v1167_v15  ;;  %v667_v17 = vand.u32 2147483648, %v1681_v19 }
 0x116   : > { %v1173_v36 = vpop.eup %1172  ;;  %v672_v38 = vmul.f32 %v1735_v16, %v1707_v46  ;;  %v645_v43 = vadd.f32 %v1701_v39, %v644_v27  ;;  %vm676_vm5 = vweird.f32 %v1707_v46  ;;  %vm677_vm7 = vweird.f32 %v1735_v16  ;;  %vm663_vm9 = vmor %vm661_vm3, %vm662_vm4 }
 0x117   : > { %v1757_v40 = vpop.eup %1174  ;;  %v1759_v1 = vadd.f32 1.0, %v1173_v36  ;;  %v659_v44 = vmul.f32 %v1167_v15, %v658_v34  ;;  %v680_v28 = vand.u32 2147483647, %v1707_v46  ;;  %v682_v45 = vand.u32 2147483648, %v1707_v46  ;;  %vm678_vm11 = vmor %vm676_vm5, %vm677_vm7 }
 0x118   : > { %v673_v60 = vsub.f32 1.0, %v672_v38  ;;  %v1177_v47 = vpop.eup %1176  ;;  %v649_v48 = vsel %vm648_vm6, %v1701_v39, %v645_v43  ;;  %vm666_vm8 = vcmp.eq.f32.partialorder %v665_v35, 8.507059e+37  ;;  %v687_v61 = vmul.f32 %v1749_v23, %v1714_v51 }
 0x119   : > { %v660_v49 = vadd.f32 %v1167_v15, %v659_v44  ;;  %v1773_v50 = vpop.eup %1178  ;;  %v1775_v54 = vadd.f32 1.0, %v1177_v47  ;;  %v654_v62 = vsel %vm1745_vm2, %v653_v33, %v649_v48  ;;  %v668_v55 = vor.u32 1.1754944e-38, %v667_v17 }
 0x11a   : > { %v674_v56 = vmul.f32 %v1735_v16, %v673_v60  ;;  %1180 = vrcp.f32 %v1759_v1  ;;  %v765_v39 = vmul.f32 %v654_v62, %v1584_v41  ;;  %v688_v58 = vsub.f32 1.0, %v687_v61 }
 0x11b   : > { %v664_v57 = vsel %vm663_vm9, %v1167_v15, %v660_v49  ;;  %vm681_vm10 = vcmp.eq.f32.partialorder %v680_v28, 8.507059e+37  ;;  %v683_v22 = vor.u32 1.1754944e-38, %v682_v45  ;;  %vm692_vm12 = vweird.f32 %v1749_v23 }
 0x11c   : > { %v669_v63 = vsel %vm666_vm8, %v668_v55, %v664_v57  ;;  %v675_v0 = vadd.f32 %v1735_v16, %v674_v56  ;;  %833 = vmatmul.f32.gmra.mxu2 %v765_v39  ;;  %v689_v19 = vmul.f32 %v1749_v23, %v688_v58  ;;  %v695_v41 = vand.u32 2147483647, %v1714_v51  ;;  %v773_v39 = vld [vmem:[#allocation2 + $0x28] sm:$0xff] }
 0x11d   : > { %v766_v2 = vmul.f32 %v669_v63, %v1587_v42  ;;  %1182 = vrcp.f32 %v1775_v54  ;;  %v697_v6 = vand.u32 2147483648, %v1714_v51  ;;  %v702_v42 = vmul.f32 %v1757_v40, %v1723_v12 }
 0x11e   : > { %v679_v3 = vsel %vm678_vm11, %v1735_v16, %v675_v0  ;;  %v690_v46 = vadd.f32 %v1749_v23, %v689_v19  ;;  %vm691_vm13 = vweird.f32 %v1714_v51  ;;  %vm696_vm15 = vcmp.eq.f32.partialorder %v695_v41, 8.507059e+37  ;;  %v774_v0 = vld [vmem:[#allocation2 + $0x10] sm:$0xff] }
 0x11f   : > { %868 = vmatmul.f32.gmra.mxu3 %v766_v2  ;;  %v684_v7 = vsel %vm681_vm10, %v683_v22, %v679_v3  ;;  %vm693_vm14 = vmor %vm691_vm13, %vm692_vm12  ;;  %v698_v8 = vor.u32 1.1754944e-38, %v697_v6  ;;  %v703_v9 = vsub.f32 1.0, %v702_v42  ;;  %v712_v52 = vand.u32 2147483648, %v1723_v12  ;;  %v775_v3 = vld [vmem:[#allocation2 + $0x8] sm:$0xff] }
 0x120   : > { %v1181_v13 = vpop.eup %1180  ;;  %v767_v14 = vmul.f32 %v684_v7, %v1604_v4  ;;  %v694_v15 = vsel %vm693_vm14, %v1749_v23, %v690_v46  ;;  %v717_v53 = vmul.f32 %v1773_v50, %v1726_v18  ;;  %vm707_vm0 = vweird.f32 %v1757_v40  ;;  %v776_v7 = vld [vmem:[#allocation2] sm:$0xff] }
 0x121   : > { %v699_v59 = vsel %vm696_vm15, %v698_v8, %v694_v15  ;;  %v704_v16 = vmul.f32 %v1757_v40, %v703_v9  ;;  %v710_v51 = vand.u32 2147483647, %v1723_v12  ;;  %v725_v37 = vand.u32 2147483647, %v1726_v18 }
 0x122   : > { %v768_v20 = vmul.f32 %v699_v59, %v1607_v5  ;;  %v718_v21 = vsub.f32 1.0, %v717_v53  ;;  %vm706_vm1 = vweird.f32 %v1723_v12  ;;  %v727_v25 = vand.u32 2147483648, %v1726_v18 }
 0x123   : > { %v1183_v4 = vpop.eup %1182  ;;  %v705_v24 = vadd.f32 %v1757_v40, %v704_v16  ;;  %v732_v26 = vmul.f32 %v1181_v13, %v1759_v1  ;;  %vm708_vm2 = vmor %vm706_vm1, %vm707_vm0  ;;  %v713_v31 = vor.u32 1.1754944e-38, %v712_v52  ;;  %vm722_vm3 = vweird.f32 %v1773_v50  ;;  %v778_v16 = vld [vmem:[#allocation2 + $0x20] sm:$0xff] }
 0x124   : > { %836 = vmatmul.f32.gmra.mxu2 %v767_v14  ;;  %v719_v32 = vmul.f32 %v1773_v50, %v718_v21  ;;  %vm711_vm4 = vcmp.eq.f32.partialorder %v710_v51, 8.507059e+37  ;;  %vm721_vm5 = vweird.f32 %v1726_v18  ;;  %vm726_vm6 = vcmp.eq.f32.partialorder %v725_v37, 8.507059e+37  ;;  %v777_v14 = vld [vmem:[#allocation2 + $0x18] sm:$0xff] }
 0x125   : > { %v709_v5 = vsel %vm708_vm2, %v1757_v40, %v705_v24  ;;  %v733_v23 = vsub.f32 1.0, %v732_v26  ;;  %v747_v33 = vmul.f32 %v1183_v4, %v1775_v54  ;;  %vm723_vm7 = vmor %vm721_vm5, %vm722_vm3  ;;  %v728_v34 = vor.u32 1.1754944e-38, %v727_v25 }
 0x126   : > { %v714_v27 = vsel %vm711_vm4, %v713_v31, %v709_v5  ;;  %v720_v12 = vadd.f32 %v1773_v50, %v719_v32  ;;  %vm737_vm8 = vweird.f32 %v1181_v13  ;;  %v742_v36 = vand.u32 2147483648, %v1759_v1 }
 0x127   : > { %871 = vmatmul.f32.gmra.mxu3 %v768_v20  ;;  %v734_v35 = vmul.f32 %v1181_v13, %v733_v23  ;;  %v769_v17 = vmul.f32 %v714_v27, %v1626_v29  ;;  %v740_v18 = vand.u32 2147483647, %v1759_v1  ;;  %v748_v40 = vsub.f32 1.0, %v747_v33 }
 0x128   : > { %v724_v38 = vsel %vm723_vm7, %v1773_v50, %v720_v12  ;;  %vm736_vm9 = vweird.f32 %v1759_v1  ;;  %v757_v60 = vand.u32 2147483648, %v1775_v54  ;;  %vm752_vm11 = vweird.f32 %v1183_v4 }
 0x129   : > { %v729_v43 = vsel %vm726_vm6, %v728_v34, %v724_v38  ;;  %v735_v44 = vadd.f32 %v1181_v13, %v734_v35  ;;  %vm738_vm10 = vmor %vm736_vm9, %vm737_vm8  ;;  %v749_v45 = vmul.f32 %v1183_v4, %v748_v40  ;;  %v755_v47 = vand.u32 2147483647, %v1775_v54 }
 0x12a   : > { %v770_v28 = vmul.f32 %v729_v43, %v1629_v30  ;;  %v743_v29 = vor.u32 1.1754944e-38, %v742_v36  ;;  %vm741_vm12 = vcmp.eq.f32.partialorder %v740_v18, 8.507059e+37  ;;  %vm751_vm13 = vweird.f32 %v1775_v54 }
 0x12b   : > { %v739_v48 = vsel %vm738_vm10, %v1181_v13, %v735_v44  ;;  %v750_v49 = vadd.f32 %v1183_v4, %v749_v45  ;;  %vm753_vm14 = vmor %vm751_vm13, %vm752_vm11  ;;  %v758_v50 = vor.u32 1.1754944e-38, %v757_v60  ;;  %vm756_vm15 = vcmp.eq.f32.partialorder %v755_v47, 8.507059e+37 }
 0x12c   : > { %839 = vmatmul.f32.gmra.mxu2 %v769_v17  ;;  %v744_v61 = vsel %vm741_vm12, %v743_v29, %v739_v48 }
 0x12d   : > { %v754_v1 = vsel %vm753_vm14, %v1183_v4, %v750_v49  ;;  %v771_v30 = vmul.f32 %v744_v61, %v1667_v10 }
 0x12e   : > { %v759_v62 = vsel %vm756_vm15, %v758_v50, %v754_v1 }
 0x12f   : > { %874 = vmatmul.f32.gmra.mxu3 %v770_v28  ;;  %v772_v55 = vmul.f32 %v759_v62, %v1670_v11 }
 0x134   : > { %842 = vmatmul.f32.gmra.mxu2 %v771_v30 }
 0x137   : > { %877 = vmatmul.f32.gmra.mxu3 %v772_v55 }
 0x189   : > { %v828_v56 = vpop.f32.mrf.mxu2 }
 0x18c   : > { %v863_v57 = vpop.f32.mrf.mxu3 }
 0x18d   : > { %v864_v58 = vadd.f32 %v863_v57, %v828_v56 }
 0x18f   : > { %v881_v63 = vadd.f32 %v864_v58, %v773_v39 }
 0x191   : > { %887 = vst [vmem:[#allocation2 + $0x28] sm:$0xff] %v881_v63 }
 0x193   : > { %v831_v54 = vpop.f32.mrf.mxu2 }
 0x198   : > { %v866_v22 = vpop.f32.mrf.mxu3 }
 0x199   : > { %v867_v2 = vadd.f32 %v866_v22, %v831_v54 }
 0x19b   : > { %v882_v19 = vadd.f32 %v867_v2, %v774_v0 }
 0x19d   : > { %888 = vst [vmem:[#allocation2 + $0x10] sm:$0xff] %v882_v19 }
 0x19f   : > { %v834_v41 = vpop.f32.mrf.mxu2 }
 0x1a2   : > { %v869_v6 = vpop.f32.mrf.mxu3 }
 0x1a3   : > { %v870_v10 = vadd.f32 %v869_v6, %v834_v41 }
 0x1a5   : > { %v883_v42 = vadd.f32 %v870_v10, %v775_v3 }
 0x1a7   : > { %889 = vst [vmem:[#allocation2 + $0x8] sm:$0xff] %v883_v42  ;;  %v837_v11 = vpop.f32.mrf.mxu2 }
 0x1aa   : > { %v872_v46 = vpop.f32.mrf.mxu3 }
 0x1ab   : > { %v873_v8 = vadd.f32 %v872_v46, %v837_v11 }
 0x1ad   : > { %v884_v9 = vadd.f32 %v873_v8, %v776_v7 }
 0x1af   : > { %890 = vst [vmem:[#allocation2] sm:$0xff] %v884_v9  ;;  %v840_v13 = vpop.f32.mrf.mxu2 }
 0x1b2   : > { %v875_v15 = vpop.f32.mrf.mxu3 }
 0x1b3   : > { %v876_v52 = vadd.f32 %v875_v15, %v840_v13 }
 0x1b5   : > { %v885_v53 = vadd.f32 %v876_v52, %v777_v14 }
 0x1b7   : > { %891 = vst [vmem:[#allocation2 + $0x18] sm:$0xff] %v885_v53  ;;  %v843_v59 = vpop.f32.mrf.mxu2 }
 0x1ba   : > { %v878_v51 = vpop.f32.mrf.mxu3 }
 0x1bb   : > { %v879_v20 = vadd.f32 %v878_v51, %v843_v59  ;;  %896 = sbr.rel (%p1049_p3) target bundleno = 456 (0x1c8), region = 56 }
 0x1bd   : > { %v886_v21 = vadd.f32 %v879_v20, %v778_v16 }
 0x1bf   : > { %892 = vst [vmem:[#allocation2 + $0x20] sm:$0xff] %v886_v21 }
 0x1c0   : > { %v897_v37 = vld [vmem:[#allocation2 + $0x28] sm:$0xff]  ;;  %v898_v4 = vld [vmem:[#allocation2 + $0x10] sm:$0xff]  ;;  %v900_v25 = vld [vmem:[#allocation2] sm:$0xff] }
 0x1c1   : > { %v899_v24 = vld [vmem:[#allocation2 + $0x8] sm:$0xff]  ;;  %903 = vst [vmem:[%s1471_s22] sm:$0xff] %v897_v37  ;;  %v901_v26 = vld [vmem:[#allocation2 + $0x18] sm:$0xff] }
 0x1c2   : > { %904 = vst [vmem:[%s1471_s22 + $0x8] sm:$0xff] %v898_v4 }
 0x1c3   : > { %905 = vst [vmem:[%s1471_s22 + $0x10] sm:$0xff] %v899_v24 }
 0x1c4   : > { %906 = vst [vmem:[%s1471_s22 + $0x18] sm:$0xff] %v900_v25 }
 0x1c5   : > { %907 = vst [vmem:[%s1471_s22 + $0x20] sm:$0xff] %v901_v26 }
 0x1c6   : > { %v902_v31 = vld [vmem:[#allocation2 + $0x20] sm:$0xff] }
 0x1c7   : > { %908 = vst [vmem:[%s1471_s22 + $0x28] sm:$0xff] %v902_v31 }
 0x1c8 PF: > { %s21_s25 = sadd.s32 1, %s1314_s25   ;;  %s1886_s21 = sld [smem:[#allocation12_spill]] }
 0x1c9   : > { %p18_p4 = scmp.ge.s32.totalorder %s21_s25, 6   ;;  %s1887_s22 = sld [smem:[#allocation9_spill]] }
 0x1ca   : > { %s1888_s15 = sld [smem:[#allocation10_spill]]  ;;  %s1890_s18 = smov %s1290_s19 }
 0x1cb   : > { %s1889_s24 = sld [smem:[#allocation11_spill]]  ;;  %s1891_s19 = smov %s1294_s20 }
 0x1cc   :  { %20 = sbr.rel (!%p18_p4) target bundleno = 9 (0x9), region = 107 }
 0x1ce   : > { %s1892_s20 = smov %s1886_s21  ;;  %s1893_s21 = smov %s1306_s23 }
 0x1d0   : > { %s1894_s23 = smov %s1888_s15 }
 0x1d1   :  { %931 = vsyncpa [#allocation4], 1 }
 0x1d2   :  { %933 = vsyncpa [#allocation4 + $0x1], 1 }
 0x1d3   :  { %934 = vsyncpa [#allocation6], 1 }
 0x1d4   :  { %936 = vsyncpa [#allocation6 + $0x1], 1 }

</bundles_post_ra>
